<compile_context>
chip_gen: v7x
topology: tpu7x:2x2x1
jax: 0.10.0
libtpu: 0.0.40
codegen_flags: <defaults>
</compile_context>

<pallas_src>
import functools

import jax
import jax.numpy as jnp
import numpy as np
from jax.experimental import pallas as pl
from jax.experimental.pallas import tpu as pltpu


def _round_up(x, m):
    return ((x + m - 1) // m) * m


# --------------------------------------------------------------------------
# Stage 1: Linear1 + LeakyReLU + Linear2, plus batch-global BN statistics.
# --------------------------------------------------------------------------
def _stage1_kernel(z_ref, w1_ref, b1_ref, w2_ref, b2_ref,
                   h2_ref, stats_ref, acc_ref, *, real_b, tile_b):
    i = pl.program_id(0)

    # ---- Linear(latent, H) + LeakyReLU(0.2) ; MXU in bf16, f32 accumulate ----
    z = z_ref[...].astype(jnp.bfloat16)
    h1 = jnp.dot(z, w1_ref[...], preferred_element_type=jnp.float32) + b1_ref[...]
    h1 = jnp.maximum(h1, 0.2 * h1)

    # ---- Linear(H, H) ----
    h2 = jnp.dot(h1.astype(jnp.bfloat16), w2_ref[...],
                 preferred_element_type=jnp.float32) + b2_ref[...]
    h2_ref[...] = h2

    # ---- BN statistics: masked (padding rows excluded) sum and sum-of-squares,
    #      accumulated across all batch tiles (batch-global, training mode). ----
    row = i * tile_b + jax.lax.broadcasted_iota(jnp.int32, (h2.shape[0], 1), 0)
    valid = (row < real_b).astype(jnp.float32)
    h2m = h2 * valid
    part = jnp.concatenate(
        [jnp.sum(h2m, axis=0, keepdims=True),
         jnp.sum(h2m * h2m, axis=0, keepdims=True)], axis=0)   # (2, H)

    @pl.when(i == 0)
    def _():
        acc_ref[...] = jnp.zeros_like(acc_ref)

    acc_ref[...] += part

    @pl.when(i == pl.num_programs(0) - 1)
    def _():
        stats_ref[...] = acc_ref[...]


# --------------------------------------------------------------------------
# Stage 2: BatchNorm normalize + LeakyReLU + Linear3 + Tanh (tiled M x N).
# --------------------------------------------------------------------------
def _stage2_kernel(stats_ref, h2_ref, gamma_ref, beta_ref, w3_ref, b3_ref,
                   out_ref, *, real_b):
    inv_n = 1.0 / float(real_b)
    mean = stats_ref[0:1, :] * inv_n
    var = stats_ref[1:2, :] * inv_n - mean * mean          # biased (training) var
    invstd = jax.lax.rsqrt(var + 1e-5)

    x = (h2_ref[...] - mean) * invstd * gamma_ref[...] + beta_ref[...]
    x = jnp.maximum(x, 0.2 * x)                            # LeakyReLU(0.2)

    y = jnp.dot(x.astype(jnp.bfloat16), w3_ref[...],
                preferred_element_type=jnp.float32) + b3_ref[...]
    out_ref[...] = jnp.tanh(y).astype(out_ref.dtype)


# --------------------------------------------------------------------------
# Wrapper
# --------------------------------------------------------------------------
@functools.partial(jax.jit, static_argnums=(2,))
def decoder_forward(z, params, img_shape):
    """z: (B, latent) f32.  Returns (B, *img_shape) f32."""
    w1, b1, w2, b2, gamma, beta, w3, b3 = params
    B, latent = z.shape
    H = w1.shape[1]
    out_dim = w3.shape[1]
    assert out_dim == int(np.prod(img_shape))

    # ---- tiling: 256-row batch tiles on big batches (MXU-friendly), 128 for
    #      medium, whole (8-padded) batch for tiny ones; 128-multiple N tiles.
    if B >= 256:
        tile_b = 256
    elif B >= 128:
        tile_b = 128
    else:
        tile_b = _round_up(B, 8)
    Bp = _round_up(B, tile_b)
    Np = _round_up(out_dim, 128)                       # lane-dense output
    tile_n = next(t for t in (512, 256, 128) if Np % t == 0)
    nbt = Bp // tile_b
    nnt = Np // tile_n

    # ---- pad activations/weights; store matmul weights as bf16 (MXU) ----
    if Bp != B:
        z = jnp.pad(z, ((0, Bp - B), (0, 0)))
    if Np != out_dim:
        w3 = jnp.pad(w3, ((0, 0), (0, Np - out_dim)))
        b3 = jnp.pad(b3, ((0, 0), (0, Np - out_dim)))
    w1b = w1.astype(jnp.bfloat16)
    w2b = w2.astype(jnp.bfloat16)
    w3b = w3.astype(jnp.bfloat16)

    # -------------------- stage 1: h2 + batch-global stats --------------------
    flops1 = 2 * Bp * (latent * H + H * H)
    bytes1 = (Bp * latent * 4 + latent * H * 2 + H * H * 2
              + 2 * H * 4 + Bp * H * 4 + 2 * H * 4)
    h2, stats = pl.pallas_call(
        functools.partial(_stage1_kernel, real_b=B, tile_b=tile_b),
        out_shape=(jax.ShapeDtypeStruct((Bp, H), jnp.float32),
                   jax.ShapeDtypeStruct((2, H), jnp.float32)),
        grid_spec=pltpu.PrefetchScalarGridSpec(
            num_scalar_prefetch=0,
            grid=(nbt,),
            in_specs=[
                pl.BlockSpec((tile_b, latent), lambda i: (i, 0)),   # z tile
                pl.BlockSpec((latent, H), lambda i: (0, 0)),        # W1 resident
                pl.BlockSpec((1, H), lambda i: (0, 0)),             # b1
                pl.BlockSpec((H, H), lambda i: (0, 0)),             # W2 resident
                pl.BlockSpec((1, H), lambda i: (0, 0)),             # b2
            ],
            out_specs=(
                pl.BlockSpec((tile_b, H), lambda i: (i, 0)),        # h2 tile
                pl.BlockSpec((2, H), lambda i: (0, 0)),             # stats (resident)
            ),
            scratch_shapes=[pltpu.VMEM((2, H), jnp.float32)]),
        compiler_params=pltpu.CompilerParams(
            dimension_semantics=("arbitrary",)),
        cost_estimate=pl.CostEstimate(
            flops=flops1, transcendentals=0, bytes_accessed=bytes1),
    )(z, w1b, b1, w2b, b2)

    # ---------- stage 2: BN normalize + LeakyReLU + Linear3 + tanh ----------
    flops2 = 2 * Bp * H * Np
    bytes2 = (Bp * H * 4 + 2 * H * 4 + 2 * H * 4
              + H * Np * 2 + Np * 4 + Bp * Np * 4)
    out = pl.pallas_call(
        functools.partial(_stage2_kernel, real_b=B),
        out_shape=jax.ShapeDtypeStruct((Bp, Np), jnp.float32),
        grid_spec=pltpu.PrefetchScalarGridSpec(
            num_scalar_prefetch=0,
            grid=(nbt, nnt),
            in_specs=[
                pl.BlockSpec((2, H), lambda i, j: (0, 0)),          # stats
                pl.BlockSpec((tile_b, H), lambda i, j: (i, 0)),     # h2 tile
                pl.BlockSpec((1, H), lambda i, j: (0, 0)),          # gamma
                pl.BlockSpec((1, H), lambda i, j: (0, 0)),          # beta
                pl.BlockSpec((H, tile_n), lambda i, j: (0, j)),     # W3 N-tile
                pl.BlockSpec((1, tile_n), lambda i, j: (0, j)),     # b3 N-tile
            ],
            out_specs=pl.BlockSpec((tile_b, tile_n), lambda i, j: (i, j)),
        ),
        compiler_params=pltpu.CompilerParams(
            dimension_semantics=("parallel", "parallel")),
        cost_estimate=pl.CostEstimate(
            flops=flops2, transcendentals=Bp * Np, bytes_accessed=bytes2),
    )(stats, h2, gamma, beta, w3b, b3)

    img_flat = out[:B, :out_dim]
    # Glue: matches img_flat.view(B, *img_shape)
    return img_flat.reshape((B,) + tuple(img_shape))


def init_params(key, latent_size, img_shape):
    """Deterministic synthetic parameters with the shapes nn.Linear/BatchNorm1d imply."""
    out_dim = int(np.prod(img_shape))
    k = jax.random.split(key, 6)

    def linear(kw, kb, fan_in, fan_out):
        bound = 1.0 / np.sqrt(fan_in)
        # stored as (in, out) — transposed vs. PyTorch's (out, in)
        w = jax.random.uniform(kw, (fan_in, fan_out), jnp.float32, -bound, bound)
        b = jax.random.uniform(kb, (1, fan_out), jnp.float32, -bound, bound)
        return w, b

    w1, b1 = linear(k[0], k[1], latent_size, 512)
    w2, b2 = linear(k[2], k[3], 512, 512)
    w3, b3 = linear(k[4], k[5], 512, out_dim)
    gamma = jnp.ones((1, 512), jnp.float32)   # BatchNorm1d weight init
    beta = jnp.zeros((1, 512), jnp.float32)   # BatchNorm1d bias init
    return (w1, b1, w2, b2, gamma, beta, w3, b3)


def decoder_reference(z, params):
    """Pure-JAX f32 reference (PyTorch semantics, training-mode BatchNorm)."""
    w1, b1, w2, b2, gamma, beta, w3, b3 = params
    h1 = z @ w1 + b1
    h1 = jnp.where(h1 >= 0.0, h1, 0.2 * h1)
    h2 = h1 @ w2 + b2
    mean = jnp.mean(h2, axis=0, keepdims=True)
    var = jnp.mean((h2 - mean) ** 2, axis=0, keepdims=True)
    x = (h2 - mean) * jax.lax.rsqrt(var + 1e-5) * gamma + beta
    x = jnp.where(x >= 0.0, x, 0.2 * x)
    return jnp.tanh(x @ w3 + b3)


if __name__ == "__main__":
    latent_size = 10
    img_shape = (1, 16, 16)          # prod = 256 (multiple of 128 -> no N padding)
    batch = 8

    key = jax.random.PRNGKey(0)
    kz, kp = jax.random.split(key)
    z = jax.random.normal(kz, (batch, latent_size), jnp.float32)
    params = init_params(kp, latent_size, img_shape)

    img = decoder_forward(z, params, img_shape)
    img = jax.block_until_ready(img)

    assert img.shape == (batch,) + img_shape
    assert bool(jnp.all(jnp.isfinite(img)))
    assert bool(jnp.all(jnp.abs(img) <= 1.0))   # tanh output range

    ref = decoder_reference(z, params).reshape((batch,) + img_shape)
    max_err = float(jnp.max(jnp.abs(img - ref)))
    assert max_err < 1e-1, f"max abs error vs f32 reference: {max_err}"

    print("KERNEL_OK")
</pallas_src>

<mosaic_0001>
module attributes {stable_mosaic.version = 11 : i64} {
  func.func @_stage1_kernel(%arg0: i32, %arg1: memref<8x10xf32, #tpu.memory_space<vmem>>, %arg2: memref<10x512xbf16, #tpu.memory_space<vmem>>, %arg3: memref<1x512xf32, #tpu.memory_space<vmem>>, %arg4: memref<512x512xbf16, #tpu.memory_space<vmem>>, %arg5: memref<1x512xf32, #tpu.memory_space<vmem>>, %arg6: memref<8x512xf32, #tpu.memory_space<vmem>>, %arg7: memref<2x512xf32, #tpu.memory_space<vmem>>, %arg8: memref<2x512xf32, #tpu.memory_space<vmem>>) attributes {dimension_semantics = [#tpu.dimension_semantics<arbitrary>], iteration_bounds = array<i64: 1>, scalar_prefetch = 0 : i64, scratch_operands = 1 : i64, tpu.core_type = #tpu.core_type<tc>, window_params = [{transform_indices = @transform_0, window_bounds = array<i64: 8, 10>}, {pipeline_mode = #tpu.pipeline_mode<synchronous>, transform_indices = @transform_1, window_bounds = array<i64: 10, 512>}, {pipeline_mode = #tpu.pipeline_mode<synchronous>, transform_indices = @transform_2, window_bounds = array<i64: 1, 512>}, {pipeline_mode = #tpu.pipeline_mode<synchronous>, transform_indices = @transform_3, window_bounds = array<i64: 512, 512>}, {pipeline_mode = #tpu.pipeline_mode<synchronous>, transform_indices = @transform_4, window_bounds = array<i64: 1, 512>}, {transform_indices = @transform_5, window_bounds = array<i64: 8, 512>}, {pipeline_mode = #tpu.pipeline_mode<synchronous>, transform_indices = @transform_6, window_bounds = array<i64: 2, 512>}]} {
    %c0 = arith.constant 0 : index
    %c0_0 = arith.constant 0 : index
    %0 = vector.load %arg1[%c0, %c0_0] : memref<8x10xf32, #tpu.memory_space<vmem>>, vector<8x10xf32>
    %1 = arith.truncf %0 : vector<8x10xf32> to vector<8x10xbf16>
    %c0_1 = arith.constant 0 : index
    %c0_2 = arith.constant 0 : index
    %2 = vector.load %arg2[%c0_1, %c0_2] : memref<10x512xbf16, #tpu.memory_space<vmem>>, vector<10x512xbf16>
    %cst = arith.constant dense<0.000000e+00> : vector<8x512xf32>
    %3 = tpu.matmul %1, %2, %cst {dimension_numbers = #tpu.dot_dimension_numbers<[1], [0], [0], [1], [0, 0, 1, 1], [], []>} : vector<8x10xbf16>, vector<10x512xbf16>, vector<8x512xf32> -> vector<8x512xf32>
    %c0_3 = arith.constant 0 : index
    %c0_4 = arith.constant 0 : index
    %4 = vector.load %arg3[%c0_3, %c0_4] : memref<1x512xf32, #tpu.memory_space<vmem>>, vector<1x512xf32>
    %5 = vector.broadcast %4 : vector<1x512xf32> to vector<8x512xf32>
    %6 = arith.addf %3, %5 : vector<8x512xf32>
    %cst_5 = arith.constant 2.000000e-01 : f32
    %7 = vector.broadcast %cst_5 : f32 to vector<8x512xf32>
    %8 = arith.mulf %7, %6 : vector<8x512xf32>
    %9 = arith.maximumf %6, %8 : vector<8x512xf32>
    %10 = arith.truncf %9 : vector<8x512xf32> to vector<8x512xbf16>
    %c0_6 = arith.constant 0 : index
    %c0_7 = arith.constant 0 : index
    %11 = vector.load %arg4[%c0_6, %c0_7] : memref<512x512xbf16, #tpu.memory_space<vmem>>, vector<512x512xbf16>
    %cst_8 = arith.constant dense<0.000000e+00> : vector<8x512xf32>
    %12 = tpu.matmul %10, %11, %cst_8 {dimension_numbers = #tpu.dot_dimension_numbers<[1], [0], [0], [1], [0, 0, 1, 1], [], []>} : vector<8x512xbf16>, vector<512x512xbf16>, vector<8x512xf32> -> vector<8x512xf32>
    %c0_9 = arith.constant 0 : index
    %c0_10 = arith.constant 0 : index
    %13 = vector.load %arg5[%c0_9, %c0_10] : memref<1x512xf32, #tpu.memory_space<vmem>>, vector<1x512xf32>
    %14 = vector.broadcast %13 : vector<1x512xf32> to vector<8x512xf32>
    %15 = arith.addf %12, %14 : vector<8x512xf32>
    %c0_11 = arith.constant 0 : index
    %c0_12 = arith.constant 0 : index
    %16 = vector.load %arg6[%c0_11, %c0_12] : memref<8x512xf32, #tpu.memory_space<vmem>>, vector<8x512xf32>
    tpu.vector_store %arg6[%c0_11, %c0_12], %15 {strides = array<i32>} : memref<8x512xf32, #tpu.memory_space<vmem>>, vector<8x512xf32>,
    %c8_i32 = arith.constant 8 : i32
    %17 = arith.muli %arg0, %c8_i32 : i32
    %18 = tpu.iota {dimensions = array<i32: 0>} : vector<8x1xi32>
    %19 = vector.broadcast %17 : i32 to vector<8x1xi32>
    %20 = arith.addi %19, %18 : vector<8x1xi32>
    %c8_i32_13 = arith.constant 8 : i32
    %21 = vector.broadcast %c8_i32_13 : i32 to vector<8x1xi32>
    %22 = arith.cmpi slt, %20, %21 : vector<8x1xi32>
    %23 = arith.extui %22 : vector<8x1xi1> to vector<8x1xi32>
    %24 = arith.sitofp %23 : vector<8x1xi32> to vector<8x1xf32>
    %25 = vector.broadcast %24 : vector<8x1xf32> to vector<8x512xf32>
    %26 = arith.mulf %15, %25 : vector<8x512xf32>
    %cst_14 = arith.constant dense<0.000000e+00> : vector<512xf32>
    %27 = vector.multi_reduction <add>, %26, %cst_14 [0] : vector<8x512xf32> to vector<512xf32>
    %28 = vector.shape_cast %27 : vector<512xf32> to vector<1x512xf32>
    %29 = arith.mulf %26, %26 : vector<8x512xf32>
    %cst_15 = arith.constant dense<0.000000e+00> : vector<512xf32>
    %30 = vector.multi_reduction <add>, %29, %cst_15 [0] : vector<8x512xf32> to vector<512xf32>
    %31 = vector.shape_cast %30 : vector<512xf32> to vector<1x512xf32>
    %32 = tpu.concatenate %28, %31 in 0 : vector<1x512xf32>, vector<1x512xf32> -> vector<2x512xf32>
    %c0_i32 = arith.constant 0 : i32
    %33 = arith.cmpi eq, %arg0, %c0_i32 : i32
    %34 = arith.extui %33 : i1 to i32
    %c0_i32_16 = arith.constant 0 : i32
    %35 = arith.cmpi ne, %34, %c0_i32_16 : i32
    scf.if %35 {
      %cst_23 = arith.constant 0.000000e+00 : f32
      %42 = vector.broadcast %cst_23 : f32 to vector<2x512xf32>
      %c0_24 = arith.constant 0 : index
      %c0_25 = arith.constant 0 : index
      %43 = vector.load %arg8[%c0_24, %c0_25] : memref<2x512xf32, #tpu.memory_space<vmem>>, vector<2x512xf32>
      tpu.vector_store %arg8[%c0_24, %c0_25], %42 {strides = array<i32>} : memref<2x512xf32, #tpu.memory_space<vmem>>, vector<2x512xf32>,
    } else {
    }
    %c0_17 = arith.constant 0 : index
    %c0_18 = arith.constant 0 : index
    %36 = vector.load %arg8[%c0_17, %c0_18] : memref<2x512xf32, #tpu.memory_space<vmem>>, vector<2x512xf32>
    %37 = arith.addf %36, %32 : vector<2x512xf32>
    %c0_19 = arith.constant 0 : index
    %c0_20 = arith.constant 0 : index
    %38 = vector.load %arg8[%c0_19, %c0_20] : memref<2x512xf32, #tpu.memory_space<vmem>>, vector<2x512xf32>
    tpu.vector_store %arg8[%c0_19, %c0_20], %37 {strides = array<i32>} : memref<2x512xf32, #tpu.memory_space<vmem>>, vector<2x512xf32>,
    %c0_i32_21 = arith.constant 0 : i32
    %39 = arith.cmpi eq, %arg0, %c0_i32_21 : i32
    %40 = arith.extui %39 : i1 to i32
    %c0_i32_22 = arith.constant 0 : i32
    %41 = arith.cmpi ne, %40, %c0_i32_22 : i32
    scf.if %41 {
      %c0_23 = arith.constant 0 : index
      %c0_24 = arith.constant 0 : index
      %42 = vector.load %arg8[%c0_23, %c0_24] : memref<2x512xf32, #tpu.memory_space<vmem>>, vector<2x512xf32>
      %c0_25 = arith.constant 0 : index
      %c0_26 = arith.constant 0 : index
      %43 = vector.load %arg7[%c0_25, %c0_26] : memref<2x512xf32, #tpu.memory_space<vmem>>, vector<2x512xf32>
      tpu.vector_store %arg7[%c0_25, %c0_26], %42 {strides = array<i32>} : memref<2x512xf32, #tpu.memory_space<vmem>>, vector<2x512xf32>,
    } else {
    }
    return
  }
  func.func @transform_0(%arg0: i32) -> (i32, i32) {
    %c0_i32 = arith.constant 0 : i32
    %c0_i32_0 = arith.constant 0 : i32
    return %arg0, %c0_i32 : i32, i32
  }
  func.func @transform_1(%arg0: i32) -> (i32, i32) {
    %c0_i32 = arith.constant 0 : i32
    %c0_i32_0 = arith.constant 0 : i32
    %c0_i32_1 = arith.constant 0 : i32
    return %c0_i32, %c0_i32_0 : i32, i32
  }
  func.func @transform_2(%arg0: i32) -> (i32, i32) {
    %c0_i32 = arith.constant 0 : i32
    %c0_i32_0 = arith.constant 0 : i32
    %c0_i32_1 = arith.constant 0 : i32
    return %c0_i32, %c0_i32_0 : i32, i32
  }
  func.func @transform_3(%arg0: i32) -> (i32, i32) {
    %c0_i32 = arith.constant 0 : i32
    %c0_i32_0 = arith.constant 0 : i32
    %c0_i32_1 = arith.constant 0 : i32
    return %c0_i32, %c0_i32_0 : i32, i32
  }
  func.func @transform_4(%arg0: i32) -> (i32, i32) {
    %c0_i32 = arith.constant 0 : i32
    %c0_i32_0 = arith.constant 0 : i32
    %c0_i32_1 = arith.constant 0 : i32
    return %c0_i32, %c0_i32_0 : i32, i32
  }
  func.func @transform_5(%arg0: i32) -> (i32, i32) {
    %c0_i32 = arith.constant 0 : i32
    %c0_i32_0 = arith.constant 0 : i32
    return %arg0, %c0_i32 : i32, i32
  }
  func.func @transform_6(%arg0: i32) -> (i32, i32) {
    %c0_i32 = arith.constant 0 : i32
    %c0_i32_0 = arith.constant 0 : i32
    %c0_i32_1 = arith.constant 0 : i32
    return %c0_i32, %c0_i32_0 : i32, i32
  }
}

module attributes {stable_mosaic.version = 11 : i64} {
  func.func @_stage2_kernel(%arg0: i32, %arg1: i32, %arg2: memref<2x512xf32, #tpu.memory_space<vmem>>, %arg3: memref<8x512xf32, #tpu.memory_space<vmem>>, %arg4: memref<1x512xf32, #tpu.memory_space<vmem>>, %arg5: memref<1x512xf32, #tpu.memory_space<vmem>>, %arg6: memref<512x256xbf16, #tpu.memory_space<vmem>>, %arg7: memref<1x256xf32, #tpu.memory_space<vmem>>, %arg8: memref<8x256xf32, #tpu.memory_space<vmem>>) attributes {dimension_semantics = [#tpu.dimension_semantics<parallel>, #tpu.dimension_semantics<parallel>], iteration_bounds = array<i64: 1, 1>, scalar_prefetch = 0 : i64, scratch_operands = 0 : i64, tpu.core_type = #tpu.core_type<tc>, window_params = [{pipeline_mode = #tpu.pipeline_mode<synchronous>, transform_indices = @transform_0, window_bounds = array<i64: 2, 512>}, {transform_indices = @transform_1, window_bounds = array<i64: 8, 512>}, {pipeline_mode = #tpu.pipeline_mode<synchronous>, transform_indices = @transform_2, window_bounds = array<i64: 1, 512>}, {pipeline_mode = #tpu.pipeline_mode<synchronous>, transform_indices = @transform_3, window_bounds = array<i64: 1, 512>}, {transform_indices = @transform_4, window_bounds = array<i64: 512, 256>}, {transform_indices = @transform_5, window_bounds = array<i64: 1, 256>}, {transform_indices = @transform_6, window_bounds = array<i64: 8, 256>}]} {
    %c0 = arith.constant 0 : index
    %c0_0 = arith.constant 0 : index
    %0 = vector.load %arg2[%c0, %c0_0] : memref<2x512xf32, #tpu.memory_space<vmem>>, vector<1x512xf32>
    %cst = arith.constant 1.250000e-01 : f32
    %1 = vector.broadcast %cst : f32 to vector<1x512xf32>
    %2 = arith.mulf %0, %1 : vector<1x512xf32>
    %c1 = arith.constant 1 : index
    %c0_1 = arith.constant 0 : index
    %3 = vector.load %arg2[%c1, %c0_1] : memref<2x512xf32, #tpu.memory_space<vmem>>, vector<1x512xf32>
    %cst_2 = arith.constant 1.250000e-01 : f32
    %4 = vector.broadcast %cst_2 : f32 to vector<1x512xf32>
    %5 = arith.mulf %3, %4 : vector<1x512xf32>
    %6 = arith.mulf %2, %2 : vector<1x512xf32>
    %7 = arith.subf %5, %6 : vector<1x512xf32>
    %cst_3 = arith.constant 9.99999974E-6 : f32
    %8 = vector.broadcast %cst_3 : f32 to vector<1x512xf32>
    %9 = arith.addf %7, %8 : vector<1x512xf32>
    %10 = math.rsqrt %9 : vector<1x512xf32>
    %c0_4 = arith.constant 0 : index
    %c0_5 = arith.constant 0 : index
    %11 = vector.load %arg3[%c0_4, %c0_5] : memref<8x512xf32, #tpu.memory_space<vmem>>, vector<8x512xf32>
    %12 = vector.broadcast %2 : vector<1x512xf32> to vector<8x512xf32>
    %13 = arith.subf %11, %12 : vector<8x512xf32>
    %14 = vector.broadcast %10 : vector<1x512xf32> to vector<8x512xf32>
    %15 = arith.mulf %13, %14 : vector<8x512xf32>
    %c0_6 = arith.constant 0 : index
    %c0_7 = arith.constant 0 : index
    %16 = vector.load %arg4[%c0_6, %c0_7] : memref<1x512xf32, #tpu.memory_space<vmem>>, vector<1x512xf32>
    %17 = vector.broadcast %16 : vector<1x512xf32> to vector<8x512xf32>
    %18 = arith.mulf %15, %17 : vector<8x512xf32>
    %c0_8 = arith.constant 0 : index
    %c0_9 = arith.constant 0 : index
    %19 = vector.load %arg5[%c0_8, %c0_9] : memref<1x512xf32, #tpu.memory_space<vmem>>, vector<1x512xf32>
    %20 = vector.broadcast %19 : vector<1x512xf32> to vector<8x512xf32>
    %21 = arith.addf %18, %20 : vector<8x512xf32>
    %cst_10 = arith.constant 2.000000e-01 : f32
    %22 = vector.broadcast %cst_10 : f32 to vector<8x512xf32>
    %23 = arith.mulf %22, %21 : vector<8x512xf32>
    %24 = arith.maximumf %21, %23 : vector<8x512xf32>
    %25 = arith.truncf %24 : vector<8x512xf32> to vector<8x512xbf16>
    %c0_11 = arith.constant 0 : index
    %c0_12 = arith.constant 0 : index
    %26 = vector.load %arg6[%c0_11, %c0_12] : memref<512x256xbf16, #tpu.memory_space<vmem>>, vector<512x256xbf16>
    %cst_13 = arith.constant dense<0.000000e+00> : vector<8x256xf32>
    %27 = tpu.matmul %25, %26, %cst_13 {dimension_numbers = #tpu.dot_dimension_numbers<[1], [0], [0], [1], [0, 0, 1, 1], [], []>} : vector<8x512xbf16>, vector<512x256xbf16>, vector<8x256xf32> -> vector<8x256xf32>
    %c0_14 = arith.constant 0 : index
    %c0_15 = arith.constant 0 : index
    %28 = vector.load %arg7[%c0_14, %c0_15] : memref<1x256xf32, #tpu.memory_space<vmem>>, vector<1x256xf32>
    %29 = vector.broadcast %28 : vector<1x256xf32> to vector<8x256xf32>
    %30 = arith.addf %27, %29 : vector<8x256xf32>
    %31 = math.tanh %30 : vector<8x256xf32>
    %c0_16 = arith.constant 0 : index
    %c0_17 = arith.constant 0 : index
    %32 = vector.load %arg8[%c0_16, %c0_17] : memref<8x256xf32, #tpu.memory_space<vmem>>, vector<8x256xf32>
    tpu.vector_store %arg8[%c0_16, %c0_17], %31 {strides = array<i32>} : memref<8x256xf32, #tpu.memory_space<vmem>>, vector<8x256xf32>,
    return
  }
  func.func @transform_0(%arg0: i32, %arg1: i32) -> (i32, i32) {
    %c0_i32 = arith.constant 0 : i32
    %c0_i32_0 = arith.constant 0 : i32
    %c0_i32_1 = arith.constant 0 : i32
    return %c0_i32, %c0_i32_0 : i32, i32
  }
  func.func @transform_1(%arg0: i32, %arg1: i32) -> (i32, i32) {
    %c0_i32 = arith.constant 0 : i32
    %c0_i32_0 = arith.constant 0 : i32
    return %arg0, %c0_i32 : i32, i32
  }
  func.func @transform_2(%arg0: i32, %arg1: i32) -> (i32, i32) {
    %c0_i32 = arith.constant 0 : i32
    %c0_i32_0 = arith.constant 0 : i32
    %c0_i32_1 = arith.constant 0 : i32
    return %c0_i32, %c0_i32_0 : i32, i32
  }
  func.func @transform_3(%arg0: i32, %arg1: i32) -> (i32, i32) {
    %c0_i32 = arith.constant 0 : i32
    %c0_i32_0 = arith.constant 0 : i32
    %c0_i32_1 = arith.constant 0 : i32
    return %c0_i32, %c0_i32_0 : i32, i32
  }
  func.func @transform_4(%arg0: i32, %arg1: i32) -> (i32, i32) {
    %c0_i32 = arith.constant 0 : i32
    %c0_i32_0 = arith.constant 0 : i32
    return %c0_i32, %arg1 : i32, i32
  }
  func.func @transform_5(%arg0: i32, %arg1: i32) -> (i32, i32) {
    %c0_i32 = arith.constant 0 : i32
    %c0_i32_0 = arith.constant 0 : i32
    return %c0_i32, %arg1 : i32, i32
  }
  func.func @transform_6(%arg0: i32, %arg1: i32) -> (i32, i32) {
    %c0_i32 = arith.constant 0 : i32
    return %arg0, %arg1 : i32, i32
  }
}

</mosaic_0001>

<bundles_post_ra>
// kernel: decoder_forward.3
= control target key start
LH: loop header
LB: loop body
LE: loop exit
PB: predicated region body
PF: predicated region fallthrough
CT: control target
= control target key end

     0   :  { %v37_v52 = vlaneseq  ;;  %s1095_s4 = inlined_call_operand.vmem [shape: bf16[512,256], index: 4, kind: input, shape index: {}]   ;;  %s1096_s0 = inlined_call_operand.vmem [shape: f32[2,512], index: 0, kind: input, shape index: {}]   ;;  %s1097_s1 = inlined_call_operand.vmem [shape: f32[8,512], index: 1, kind: input, shape index: {}]   ;;  %s1098_s2 = inlined_call_operand.vmem [shape: f32[1,512], index: 2, kind: input, shape index: {}]   ;;  %s1099_s3 = inlined_call_operand.vmem [shape: f32[1,512], index: 3, kind: input, shape index: {}]   ;;  %s1100_s5 = inlined_call_operand.vmem [shape: f32[1,256], index: 5, kind: input, shape index: {}]   ;;  %s1101_s6 = inlined_call_operand.vmem [shape: f32[8,256], index: 6, kind: output, shape index: {}]  }
   0x1   :  { %v705_v0 = vld [vmem:[%s1095_s4 + $0x4] ss:$8 sps:$4 sm:$0xff]   ;;  %v709_v2 = vld [vmem:[%s1095_s4] ss:$8 sps:$4 sm:$0xff]   ;;  %v711_v4 = vld [vmem:[%s1095_s4 + $0x14] ss:$8 sps:$4 sm:$0xff]  }
   0x2   :  { %v707_v1 = vld [vmem:[%s1095_s4 + $0x104] ss:$8 sps:$4 sm:$0xff]   ;;  %546 = vmatprep.subr.bf16.mxu1 %v705_v0  ;;  %v710_v3 = vld [vmem:[%s1095_s4 + $0x100] ss:$8 sps:$4 sm:$0xff]   ;;  %v713_v5 = vld [vmem:[%s1095_s4 + $0x114] ss:$8 sps:$4 sm:$0xff]  }
   0x3   :  { %587 = vmatprep.subr.bf16.mxu0 %v707_v1  ;;  %547 = vmatpush1.bf16.msra.mxu1 %v709_v2  ;;  %v715_v6 = vld [vmem:[%s1095_s4 + $0x10] ss:$8 sps:$4 sm:$0xff]   ;;  %v717_v8 = vld [vmem:[%s1095_s4 + $0x24] ss:$8 sps:$4 sm:$0xff]   ;;  %v721_v10 = vld [vmem:[%s1095_s4 + $0x20] ss:$8 sps:$4 sm:$0xff]  }
   0x4   :  { %588 = vmatpush1.bf16.msra.mxu0 %v710_v3  ;;  %548 = vmatprep.subr.bf16.mxu1 %v711_v4  ;;  %v716_v7 = vld [vmem:[%s1095_s4 + $0x110] ss:$8 sps:$4 sm:$0xff]   ;;  %v719_v9 = vld [vmem:[%s1095_s4 + $0x124] ss:$8 sps:$4 sm:$0xff]   ;;  %v722_v11 = vld [vmem:[%s1095_s4 + $0x120] ss:$8 sps:$4 sm:$0xff]  }
   0x5   :  { %589 = vmatprep.subr.bf16.mxu0 %v713_v5  ;;  %v723_v12 = vld [vmem:[%s1095_s4 + $0x34] ss:$8 sps:$4 sm:$0xff]   ;;  %v727_v14 = vld [vmem:[%s1095_s4 + $0x30] ss:$8 sps:$4 sm:$0xff]   ;;  %v729_v16 = vld [vmem:[%s1095_s4 + $0x44] ss:$8 sps:$4 sm:$0xff]  }
   0x6   :  { %v725_v13 = vld [vmem:[%s1095_s4 + $0x134] ss:$8 sps:$4 sm:$0xff]   ;;  %v728_v15 = vld [vmem:[%s1095_s4 + $0x130] ss:$8 sps:$4 sm:$0xff]   ;;  %v731_v17 = vld [vmem:[%s1095_s4 + $0x144] ss:$8 sps:$4 sm:$0xff]  }
   0x7   :  { %549 = vmatpush1.bf16.msra.mxu1 %v715_v6  ;;  %v733_v18 = vld [vmem:[%s1095_s4 + $0x40] ss:$8 sps:$4 sm:$0xff]   ;;  %v735_v20 = vld [vmem:[%s1095_s4 + $0x54] ss:$8 sps:$4 sm:$0xff]   ;;  %v739_v22 = vld [vmem:[%s1095_s4 + $0x50] ss:$8 sps:$4 sm:$0xff]  }
   0x8   :  { %590 = vmatpush1.bf16.msra.mxu0 %v716_v7  ;;  %550 = vmatprep.subr.bf16.mxu1 %v717_v8  ;;  %v734_v19 = vld [vmem:[%s1095_s4 + $0x140] ss:$8 sps:$4 sm:$0xff]   ;;  %v737_v21 = vld [vmem:[%s1095_s4 + $0x154] ss:$8 sps:$4 sm:$0xff]   ;;  %v740_v23 = vld [vmem:[%s1095_s4 + $0x150] ss:$8 sps:$4 sm:$0xff]  }
   0x9   :  { %591 = vmatprep.subr.bf16.mxu0 %v719_v9  ;;  %v741_v24 = vld [vmem:[%s1095_s4 + $0x64] ss:$8 sps:$4 sm:$0xff]   ;;  %v745_v26 = vld [vmem:[%s1095_s4 + $0x60] ss:$8 sps:$4 sm:$0xff]   ;;  %v747_v28 = vld [vmem:[%s1095_s4 + $0x74] ss:$8 sps:$4 sm:$0xff]  }
   0xa   :  { %v743_v25 = vld [vmem:[%s1095_s4 + $0x164] ss:$8 sps:$4 sm:$0xff]   ;;  %v746_v27 = vld [vmem:[%s1095_s4 + $0x160] ss:$8 sps:$4 sm:$0xff]   ;;  %v749_v29 = vld [vmem:[%s1095_s4 + $0x174] ss:$8 sps:$4 sm:$0xff]  }
   0xb   :  { %551 = vmatpush1.bf16.msra.mxu1 %v721_v10  ;;  %v751_v30 = vld [vmem:[%s1095_s4 + $0x70] ss:$8 sps:$4 sm:$0xff]   ;;  %v753_v32 = vld [vmem:[%s1095_s4 + $0x84] ss:$8 sps:$4 sm:$0xff]   ;;  %v757_v34 = vld [vmem:[%s1095_s4 + $0x80] ss:$8 sps:$4 sm:$0xff]  }
   0xc   :  { %592 = vmatpush1.bf16.msra.mxu0 %v722_v11  ;;  %552 = vmatprep.subr.bf16.mxu1 %v723_v12  ;;  %v752_v31 = vld [vmem:[%s1095_s4 + $0x170] ss:$8 sps:$4 sm:$0xff]   ;;  %v755_v33 = vld [vmem:[%s1095_s4 + $0x184] ss:$8 sps:$4 sm:$0xff]   ;;  %v758_v35 = vld [vmem:[%s1095_s4 + $0x180] ss:$8 sps:$4 sm:$0xff]  }
   0xd   :  { %593 = vmatprep.subr.bf16.mxu0 %v725_v13  ;;  %v759_v36 = vld [vmem:[%s1095_s4 + $0x94] ss:$8 sps:$4 sm:$0xff]   ;;  %v763_v38 = vld [vmem:[%s1095_s4 + $0x90] ss:$8 sps:$4 sm:$0xff]   ;;  %v765_v40 = vld [vmem:[%s1095_s4 + $0xa4] ss:$8 sps:$4 sm:$0xff]  }
   0xe   :  { %v761_v37 = vld [vmem:[%s1095_s4 + $0x194] ss:$8 sps:$4 sm:$0xff]   ;;  %v764_v39 = vld [vmem:[%s1095_s4 + $0x190] ss:$8 sps:$4 sm:$0xff]   ;;  %v767_v41 = vld [vmem:[%s1095_s4 + $0x1a4] ss:$8 sps:$4 sm:$0xff]  }
   0xf   :  { %553 = vmatpush1.bf16.msra.mxu1 %v727_v14  ;;  %v769_v42 = vld [vmem:[%s1095_s4 + $0xa0] ss:$8 sps:$4 sm:$0xff]   ;;  %v771_v44 = vld [vmem:[%s1095_s4 + $0xb4] ss:$8 sps:$4 sm:$0xff]   ;;  %v775_v48 = vld [vmem:[%s1095_s4 + $0xb0] ss:$8 sps:$4 sm:$0xff]  }
  0x10   :  { %594 = vmatpush1.bf16.msra.mxu0 %v728_v15  ;;  %554 = vmatprep.subr.bf16.mxu1 %v729_v16  ;;  %v770_v43 = vld [vmem:[%s1095_s4 + $0x1a0] ss:$8 sps:$4 sm:$0xff]   ;;  %v773_v45 = vld [vmem:[%s1095_s4 + $0x1b4] ss:$8 sps:$4 sm:$0xff]   ;;  %v776_v49 = vld [vmem:[%s1095_s4 + $0x1b0] ss:$8 sps:$4 sm:$0xff]  }
  0x11   :  { %595 = vmatprep.subr.bf16.mxu0 %v731_v17  ;;  %v23_v46 = vld [vmem:[%s1096_s0] ss:$2 sm:$0xf]  ;;  %v636_v47 = vld [vmem:[%s1096_s0 + $0x1] ss:$2 sm:$0xf] }
  0x12   :  { %v992_v50 = vmul.f32 0.125, %v23_v46  ;;  %v27_v51 = vmul.f32 0.125, %v636_v47  ;;  %v777_v53 = vld [vmem:[%s1095_s4 + $0xc4] ss:$8 sps:$4 sm:$0xff]   ;;  %v781_v56 = vld [vmem:[%s1095_s4 + $0xc0] ss:$8 sps:$4 sm:$0xff]  }
  0x13   :  { %555 = vmatpush1.bf16.msra.mxu1 %v733_v18  ;;  %v779_v54 = vld [vmem:[%s1095_s4 + $0x1c4] ss:$8 sps:$4 sm:$0xff]   ;;  %v782_v57 = vld [vmem:[%s1095_s4 + $0x1c0] ss:$8 sps:$4 sm:$0xff]   ;;  %v38_v59 = vshrl.u32 %v37_v52, 7  ;;  %v35_v17 = vld [vmem:[%s1097_s1 + $0x18] sm:$0xff] }
  0x14   :  { %596 = vmatpush1.bf16.msra.mxu0 %v734_v19  ;;  %556 = vmatprep.subr.bf16.mxu1 %v735_v20  ;;  %v28_v55 = vmul.f32 %v992_v50, %v992_v50  ;;  %v783_v60 = vld [vmem:[%s1095_s4 + $0xd4] ss:$8 sps:$4 sm:$0xff]   ;;  %v787_v63 = vld [vmem:[%s1095_s4 + $0xd0] ss:$8 sps:$4 sm:$0xff]   ;;  %v789_v3 = vld [vmem:[%s1095_s4 + $0xe4] ss:$8 sps:$4 sm:$0xff]  }
  0x15   :  { %597 = vmatprep.subr.bf16.mxu0 %v737_v21  ;;  %v785_v61 = vld [vmem:[%s1095_s4 + $0x1d4] ss:$8 sps:$4 sm:$0xff]   ;;  %v788_v0 = vld [vmem:[%s1095_s4 + $0x1d0] ss:$8 sps:$4 sm:$0xff]   ;;  %v1020_v1 = vsub.s32 1, %v38_v59  ;;  %v1022_v2 = vsub.s32 3, %v38_v59 }
  0x16   :  { %v29_v58 = vsub.f32 %v27_v51, %v28_v55  ;;  %v791_v4 = vld [vmem:[%s1095_s4 + $0x1e4] ss:$8 sps:$4 sm:$0xff]   ;;  %v1030_v5 = vsub.s32 0, %v38_v59  ;;  %v47_v6 = vsub.s32 2, %v38_v59  ;;  %v793_v7 = vld [vmem:[%s1095_s4 + $0xe0] ss:$8 sps:$4 sm:$0xff]  }
  0x17   :  { %557 = vmatpush1.bf16.msra.mxu1 %v739_v22  ;;  %v794_v8 = vld [vmem:[%s1095_s4 + $0x1e0] ss:$8 sps:$4 sm:$0xff]   ;;  %v795_v9 = vld [vmem:[%s1095_s4 + $0xf4] ss:$8 sps:$4 sm:$0xff]   ;;  %v44_v10 = vrot.slane %v992_v50, %v1020_v1  ;;  %v52_v14 = vrot.slane %v992_v50, %v1022_v2  ;;  %v799_v21 = vld [vmem:[%s1095_s4 + $0xf0] ss:$8 sps:$4 sm:$0xff]  }
  0x18   :  { %598 = vmatpush1.bf16.msra.mxu0 %v740_v23  ;;  %558 = vmatprep.subr.bf16.mxu1 %v741_v24  ;;  %v30_v62 = vadd.f32 1e-05, %v29_v58  ;;  %v797_v11 = vld [vmem:[%s1095_s4 + $0x1f4] ss:$8 sps:$4 sm:$0xff]   ;;  %v33_v12 = vld [vmem:[%s1097_s1 + $0x8] sm:$0xff]  ;;  %v40_v15 = vrot.slane %v992_v50, %v1030_v5  ;;  %v48_v16 = vrot.slane %v992_v50, %v47_v6  ;;  %v32_v18 = vld [vmem:[%s1097_s1] sm:$0xff] }
  0x19   :  { %599 = vmatprep.subr.bf16.mxu0 %v743_v25  ;;  %v86_v13 = vld [vmem:[%s1098_s2] sm:$0xf]  ;;  %v34_v19 = vld [vmem:[%s1097_s1 + $0x10] sm:$0xff]  ;;  %v58_v23 = vsub.f32 %v33_v12, %v44_v10  ;;  %v60_v25 = vsub.f32 %v35_v17, %v52_v14 }
  0x1a   :  { %801 = vrsqrt.f32 %v30_v62  ;;  %v112_v20 = vld [vmem:[%s1099_s3] sm:$0xf]  ;;  %v800_v22 = vld [vmem:[%s1095_s4 + $0x1f0] ss:$8 sps:$4 sm:$0xff]   ;;  %v95_v24 = vrot.slane %v86_v13, %v1020_v1 }
  0x1b   :  { %559 = vmatpush1.bf16.msra.mxu1 %v745_v26  ;;  %v57_v26 = vsub.f32 %v32_v18, %v40_v15 }
  0x1c   :  { %600 = vmatpush1.bf16.msra.mxu0 %v746_v27  ;;  %560 = vmatprep.subr.bf16.mxu1 %v747_v28  ;;  %v59_v27 = vsub.f32 %v34_v19, %v48_v16 }
  0x1d   :  { %601 = vmatprep.subr.bf16.mxu0 %v749_v29  ;;  %v121_v29 = vrot.slane %v112_v20, %v1020_v1 }
  0x1f   :  { %561 = vmatpush1.bf16.msra.mxu1 %v751_v30  ;;  %v103_v30 = vrot.slane %v86_v13, %v1022_v2 }
  0x20   :  { %602 = vmatpush1.bf16.msra.mxu0 %v752_v31  ;;  %562 = vmatprep.subr.bf16.mxu1 %v753_v32  ;;  %v91_v31 = vrot.slane %v86_v13, %v1030_v5  ;;  %v99_v32 = vrot.slane %v86_v13, %v47_v6 }
  0x21   :  { %603 = vmatprep.subr.bf16.mxu0 %v755_v33 }
  0x23   :  { %563 = vmatpush1.bf16.msra.mxu1 %v757_v34 }
  0x24   :  { %604 = vmatpush1.bf16.msra.mxu0 %v758_v35  ;;  %564 = vmatprep.subr.bf16.mxu1 %v759_v36  ;;  %v802_v28 = vpop.eup %801 }
  0x25   :  { %605 = vmatprep.subr.bf16.mxu0 %v761_v37  ;;  %v69_v33 = vrot.slane %v802_v28, %v1020_v1  ;;  %v77_v34 = vrot.slane %v802_v28, %v1022_v2  ;;  %v65_v35 = vrot.slane %v802_v28, %v1030_v5  ;;  %v73_v36 = vrot.slane %v802_v28, %v47_v6 }
  0x26   :  { %v129_v37 = vrot.slane %v112_v20, %v1022_v2 }
  0x27   :  { %565 = vmatpush1.bf16.msra.mxu1 %v763_v38  ;;  %v117_v38 = vrot.slane %v112_v20, %v1030_v5 }
  0x28   :  { %606 = vmatpush1.bf16.msra.mxu0 %v764_v39  ;;  %566 = vmatprep.subr.bf16.mxu1 %v765_v40  ;;  %v125_v39 = vrot.slane %v112_v20, %v47_v6  ;;  %v83_v40 = vmul.f32 %v69_v33, %v58_v23 }
  0x29   :  { %607 = vmatprep.subr.bf16.mxu0 %v767_v41  ;;  %v85_v41 = vmul.f32 %v77_v34, %v60_v25 }
  0x2b   :  { %567 = vmatpush1.bf16.msra.mxu1 %v769_v42  ;;  %v82_v42 = vmul.f32 %v65_v35, %v57_v26 }
  0x2c   :  { %608 = vmatpush1.bf16.msra.mxu0 %v770_v43  ;;  %568 = vmatprep.subr.bf16.mxu1 %v771_v44  ;;  %v84_v43 = vmul.f32 %v73_v36, %v59_v27  ;;  %v109_v44 = vmul.f32 %v95_v24, %v83_v40 }
  0x2d   :  { %609 = vmatprep.subr.bf16.mxu0 %v773_v45  ;;  %v111_v45 = vmul.f32 %v103_v30, %v85_v41  ;;  %v108_v46 = vmul.f32 %v91_v31, %v82_v42 }
  0x2e   :  { %v110_v47 = vmul.f32 %v99_v32, %v84_v43 }
  0x2f   :  { %569 = vmatpush1.bf16.msra.mxu1 %v775_v48  ;;  %v135_v48 = vadd.f32 %v121_v29, %v109_v44  ;;  %v134_v50 = vadd.f32 %v117_v38, %v108_v46 }
  0x30   :  { %610 = vmatpush1.bf16.msra.mxu0 %v776_v49  ;;  %570 = vmatprep.subr.bf16.mxu1 %v777_v53  ;;  %v137_v49 = vadd.f32 %v129_v37, %v111_v45  ;;  %v136_v51 = vadd.f32 %v125_v39, %v110_v47 }
  0x31   :  { %611 = vmatprep.subr.bf16.mxu0 %v779_v54  ;;  %v139_v52 = vmul.f32 0.2, %v135_v48  ;;  %v138_v54 = vmul.f32 0.2, %v134_v50 }
  0x32   :  { %v141_v53 = vmul.f32 0.2, %v137_v49  ;;  %v140_v55 = vmul.f32 0.2, %v136_v51 }
  0x33   :  { %571 = vmatpush1.bf16.msra.mxu1 %v781_v56  ;;  %v143_v56 = vmax.f32 %v135_v48, %v139_v52  ;;  %v142_v58 = vmax.f32 %v134_v50, %v138_v54 }
  0x34   :  { %612 = vmatpush1.bf16.msra.mxu0 %v782_v57  ;;  %572 = vmatprep.subr.bf16.mxu1 %v783_v60  ;;  %v145_v57 = vmax.f32 %v137_v49, %v141_v53  ;;  %v144_v59 = vmax.f32 %v136_v51, %v140_v55 }
  0x35   :  { %613 = vmatprep.subr.bf16.mxu0 %v785_v61  ;;  %v147_v60 = vpack.c.bf16 %v143_v56, %v143_v56  ;;  %v146_v62 = vpack.c.bf16 %v142_v58, %v142_v58 }
  0x36   :  { %v149_v61 = vpack.c.bf16 %v145_v57, %v145_v57 }
  0x37   :  { %573 = vmatpush1.bf16.msra.mxu1 %v787_v63  ;;  %v148_v63 = vpack.c.bf16 %v144_v59, %v144_v59  ;;  %578 = vmatprep.mubr.bf16.mxu1 %v147_v60 }
  0x38   :  { %614 = vmatpush1.bf16.msra.mxu0 %v788_v0  ;;  %574 = vmatprep.subr.bf16.mxu1 %v789_v3  ;;  %v214_v0 = vld [vmem:[%s1100_s5] sm:$0x3] }
  0x39   :  { %615 = vmatprep.subr.bf16.mxu0 %v791_v4  ;;  %619 = vmatprep.mubr.bf16.mxu0 %v149_v61  ;;  %v219_v2 = vrot.slane %v214_v0, %v1030_v5  ;;  %v223_v3 = vrot.slane %v214_v0, %v1020_v1 }
  0x3b   :  { %575 = vmatpush1.bf16.msra.mxu1 %v793_v7 }
  0x3c   :  { %616 = vmatpush1.bf16.msra.mxu0 %v794_v8  ;;  %576 = vmatprep.subr.bf16.mxu1 %v795_v9 }
  0x3d   :  { %617 = vmatprep.subr.bf16.mxu0 %v797_v11 }
  0x3f   :  { %577 = vmatpush1.bf16.msra.mxu1 %v799_v21 }
  0x40   :  { %618 = vmatpush1.bf16.msra.mxu0 %v800_v22 }
  0x42   :  { %579 = vmatmul.mubr.bf16.vlgmr.msra.gmra.mrb[0].mxu1 %v146_v62 }
  0x43   :  { %620 = vmatmul.mubr.bf16.vlgmr.msra.gmra.mrb[0].mxu0 %v148_v63 }
 0x115   :  { %v580_v4 = vpop.f32.mrb[0].mxu1 }
 0x116   :  { %v621_v6 = vpop.f32.mrb[0].mxu0  ;;  %v581_v7 = vadd.f32 %v580_v4, %v219_v2  ;;  %v582_v8 = vpop.f32.mrb[1].mxu1 }
 0x117   :  { %v623_v9 = vpop.f32.mrb[1].mxu0  ;;  %v583_v10 = vadd.f32 %v582_v8, %v223_v3  ;;  %v584_v11 = vpop.f32.mrb[2].mxu1 }
 0x118   :  { %v625_v12 = vpop.f32.mrb[2].mxu0  ;;  %v622_v13 = vadd.f32 %v621_v6, %v581_v7  ;;  %v585_v14 = vpop.f32.mrb[3].mxu1 }
 0x119   :  { %v626_v15 = vpop.f32.mrb[3].mxu0  ;;  %v624_v16 = vadd.f32 %v623_v9, %v583_v10 }
 0x11a   :  { %803 = vtanh.f32 %v622_v13 }
 0x11b   :  { %805 = vtanh.f32 %v624_v16 }
 0x124   :  { %v804_v17 = vpop.eup %803 }
 0x125   :  { %v806_v18 = vpop.eup %805  ;;  %630 = vst [vmem:[%s1101_s6] sm:$0xff] %v804_v17 }
 0x126   :  { %631 = vst [vmem:[%s1101_s6 + $0x8] sm:$0xff] %v806_v18 }

// kernel: decoder_forward.2
= control target key start
LH: loop header
LB: loop body
LE: loop exit
PB: predicated region body
PF: predicated region fallthrough
CT: control target
= control target key end

     0   :  { %vm71_vm0 = vcmask 1044480   ;;  %v1596_v1 = vmov 0   ;;  %vm67_vm1 = vcmask 80896   ;;  %vm1200_vm2 = vcmask 1040384   ;;  %s2088_s1 = inlined_call_operand.vmem [shape: bf16[10,512], index: 1, kind: input, shape index: {}]   ;;  %s2089_s0 = inlined_call_operand.vmem [shape: f32[8,10], index: 0, kind: input, shape index: {}]   ;;  %s2090_s3 = inlined_call_operand.vmem [shape: bf16[512,512], index: 3, kind: input, shape index: {}]   ;;  %s2091_s2 = inlined_call_operand.vmem [shape: f32[1,512], index: 2, kind: input, shape index: {}]   ;;  %s2092_s4 = inlined_call_operand.vmem [shape: f32[1,512], index: 4, kind: input, shape index: {}]   ;;  %s2093_s5 = inlined_call_operand.vmem [shape: f32[8,512], index: 5, kind: output, shape index: {0}]   ;;  %s2094_s6 = inlined_call_operand.vmem [shape: f32[2,512], index: 6, kind: output, shape index: {1}]  }
   0x1   :  { %v1398_v0 = vld [vmem:[%s2088_s1 + $0x4] ss:$16 sps:$4 sm:$0x1f]   ;;  %116 = vmatprep.mubr.bf16.mxu0 %v1596_v1  ;;  %157 = vmatprep.mubr.bf16.mxu1 %v1596_v1  ;;  %v1400_v2 = vld [vmem:[%s2088_s1] ss:$16 sps:$4 sm:$0x1f]  }
   0x2   :  { %v23_v3 = vld [vmem:[%s2089_s0] sm:$0xff]  ;;  %1252 = vmatprep.subr.msk.bf16.mxu0 %vm71_vm0, %v1398_v0  ;;  %v1401_v4 = vld [vmem:[%s2088_s1 + $0xc] ss:$16 sps:$4 sm:$0x1f]   ;;  %v73_v5 = vsel %vm71_vm0, %v1400_v2, 0 }
   0x3   :  { %v24_v6 = vpack.c.bf16 %v23_v3, %v23_v3  ;;  %v1403_v7 = vld [vmem:[%s2088_s1 + $0x8] ss:$16 sps:$4 sm:$0x1f]   ;;  %85 = vmatpush1.bf16.msra.mxu0 %v73_v5  ;;  %1254 = vmatprep.subr.msk.bf16.mxu1 %vm71_vm0, %v1401_v4  ;;  %v1404_v8 = vld [vmem:[%s2090_s3] ss:$16 sps:$4 sm:$0xff]  }
   0x4   :  { %v1406_v9 = vld [vmem:[%s2090_s3 + $0x4] ss:$16 sps:$4 sm:$0xff]   ;;  %v79_v10 = vsel %vm71_vm0, %v1403_v7, 0  ;;  %v1409_v11 = vld [vmem:[%s2090_s3 + $0xc] ss:$16 sps:$4 sm:$0xff]  }
   0x5   :  { %126 = vmatpush1.bf16.msra.mxu1 %v79_v10  ;;  %968 = vmatprep.subr.bf16.mxu0 %v1406_v9  ;;  %v1407_v12 = vld [vmem:[%s2090_s3 + $0x8] ss:$16 sps:$4 sm:$0xff]   ;;  %v1412_v13 = vld [vmem:[%s2090_s3 + $0x24] ss:$16 sps:$4 sm:$0xff]   ;;  %v1410_v14 = vld [vmem:[%s2090_s3 + $0x20] ss:$16 sps:$4 sm:$0xff]  }
   0x6   :  { %1253 = vmatmul.mubr.msk.bf16.vlgmr.msra.gmra.mrb[0].mxu0 %vm67_vm1, %v24_v6  ;;  %1050 = vmatprep.subr.bf16.mxu1 %v1409_v11  ;;  %v1415_v15 = vld [vmem:[%s2090_s3 + $0x2c] ss:$16 sps:$4 sm:$0xff]   ;;  %v1418_v16 = vld [vmem:[%s2090_s3 + $0x44] ss:$16 sps:$4 sm:$0xff]   ;;  %v1413_v17 = vld [vmem:[%s2090_s3 + $0x28] ss:$16 sps:$4 sm:$0xff]   ;;  %v31_v11 = vlaneseq }
   0x7   :  { %969 = vmatpush1.bf16.msra.mxu0 %v1404_v8  ;;  %v1421_v18 = vld [vmem:[%s2090_s3 + $0x4c] ss:$16 sps:$4 sm:$0xff]   ;;  %v1416_v19 = vld [vmem:[%s2090_s3 + $0x40] ss:$16 sps:$4 sm:$0xff]   ;;  %v1424_v20 = vld [vmem:[%s2090_s3 + $0x64] ss:$16 sps:$4 sm:$0xff]  }
   0x8   :  { %1255 = vmatmul.mubr.msk.bf16.vlgmr.msra.gmra.mrb[0].mxu1 %vm67_vm1, %v24_v6  ;;  %970 = vmatprep.subr.bf16.mxu0 %v1412_v13  ;;  %v1419_v21 = vld [vmem:[%s2090_s3 + $0x48] ss:$16 sps:$4 sm:$0xff]   ;;  %v1427_v22 = vld [vmem:[%s2090_s3 + $0x6c] ss:$16 sps:$4 sm:$0xff]   ;;  %v1422_v23 = vld [vmem:[%s2090_s3 + $0x60] ss:$16 sps:$4 sm:$0xff]  }
   0x9   :  { %1051 = vmatpush1.bf16.msra.mxu1 %v1407_v12  ;;  %v1430_v24 = vld [vmem:[%s2090_s3 + $0x84] ss:$16 sps:$4 sm:$0xff]   ;;  %v1425_v25 = vld [vmem:[%s2090_s3 + $0x68] ss:$16 sps:$4 sm:$0xff]   ;;  %v1433_v26 = vld [vmem:[%s2090_s3 + $0x8c] ss:$16 sps:$4 sm:$0xff]  }
   0xa   :  { %1052 = vmatprep.subr.bf16.mxu1 %v1415_v15  ;;  %v1428_v27 = vld [vmem:[%s2090_s3 + $0x80] ss:$16 sps:$4 sm:$0xff]   ;;  %v1436_v28 = vld [vmem:[%s2090_s3 + $0xa4] ss:$16 sps:$4 sm:$0xff]   ;;  %v1431_v29 = vld [vmem:[%s2090_s3 + $0x88] ss:$16 sps:$4 sm:$0xff]  }
   0xb   :  { %971 = vmatpush1.bf16.msra.mxu0 %v1410_v14  ;;  %v1439_v30 = vld [vmem:[%s2090_s3 + $0xac] ss:$16 sps:$4 sm:$0xff]   ;;  %v1434_v31 = vld [vmem:[%s2090_s3 + $0xa0] ss:$16 sps:$4 sm:$0xff]   ;;  %v1442_v32 = vld [vmem:[%s2090_s3 + $0xc4] ss:$16 sps:$4 sm:$0xff]  }
   0xc   :  { %972 = vmatprep.subr.bf16.mxu0 %v1418_v16  ;;  %v1437_v33 = vld [vmem:[%s2090_s3 + $0xa8] ss:$16 sps:$4 sm:$0xff]   ;;  %v1445_v34 = vld [vmem:[%s2090_s3 + $0xcc] ss:$16 sps:$4 sm:$0xff]   ;;  %v1440_v35 = vld [vmem:[%s2090_s3 + $0xc0] ss:$16 sps:$4 sm:$0xff]  }
   0xd   :  { %1053 = vmatpush1.bf16.msra.mxu1 %v1413_v17  ;;  %v1448_v36 = vld [vmem:[%s2090_s3 + $0xe4] ss:$16 sps:$4 sm:$0xff]   ;;  %v1443_v37 = vld [vmem:[%s2090_s3 + $0xc8] ss:$16 sps:$4 sm:$0xff]   ;;  %v1451_v38 = vld [vmem:[%s2090_s3 + $0xec] ss:$16 sps:$4 sm:$0xff]  }
   0xe   :  { %1054 = vmatprep.subr.bf16.mxu1 %v1421_v18  ;;  %v1446_v39 = vld [vmem:[%s2090_s3 + $0xe0] ss:$16 sps:$4 sm:$0xff]   ;;  %v1454_v40 = vld [vmem:[%s2090_s3 + $0x104] ss:$16 sps:$4 sm:$0xff]   ;;  %v1449_v41 = vld [vmem:[%s2090_s3 + $0xe8] ss:$16 sps:$4 sm:$0xff]  }
   0xf   :  { %973 = vmatpush1.bf16.msra.mxu0 %v1416_v19  ;;  %v1457_v42 = vld [vmem:[%s2090_s3 + $0x10c] ss:$16 sps:$4 sm:$0xff]   ;;  %v1452_v43 = vld [vmem:[%s2090_s3 + $0x100] ss:$16 sps:$4 sm:$0xff]   ;;  %v1460_v44 = vld [vmem:[%s2090_s3 + $0x124] ss:$16 sps:$4 sm:$0xff]  }
  0x10   :  { %974 = vmatprep.subr.bf16.mxu0 %v1424_v20  ;;  %v1455_v45 = vld [vmem:[%s2090_s3 + $0x108] ss:$16 sps:$4 sm:$0xff]   ;;  %v1458_v46 = vld [vmem:[%s2090_s3 + $0x120] ss:$16 sps:$4 sm:$0xff]   ;;  %v1463_v47 = vld [vmem:[%s2090_s3 + $0x12c] ss:$16 sps:$4 sm:$0xff]  }
  0x11   :  { %1055 = vmatpush1.bf16.msra.mxu1 %v1419_v21  ;;  %v1461_v48 = vld [vmem:[%s2090_s3 + $0x128] ss:$16 sps:$4 sm:$0xff]   ;;  %v1466_v49 = vld [vmem:[%s2090_s3 + $0x144] ss:$16 sps:$4 sm:$0xff]   ;;  %v1469_v50 = vld [vmem:[%s2090_s3 + $0x14c] ss:$16 sps:$4 sm:$0xff]  }
  0x12   :  { %1056 = vmatprep.subr.bf16.mxu1 %v1427_v22  ;;  %v1464_v51 = vld [vmem:[%s2090_s3 + $0x140] ss:$16 sps:$4 sm:$0xff]   ;;  %v1472_v52 = vld [vmem:[%s2090_s3 + $0x164] ss:$16 sps:$4 sm:$0xff]   ;;  %v1467_v53 = vld [vmem:[%s2090_s3 + $0x148] ss:$16 sps:$4 sm:$0xff]  }
  0x13   :  { %975 = vmatpush1.bf16.msra.mxu0 %v1422_v23  ;;  %v1475_v54 = vld [vmem:[%s2090_s3 + $0x16c] ss:$16 sps:$4 sm:$0xff]   ;;  %v1470_v55 = vld [vmem:[%s2090_s3 + $0x160] ss:$16 sps:$4 sm:$0xff]   ;;  %v1478_v56 = vld [vmem:[%s2090_s3 + $0x184] ss:$16 sps:$4 sm:$0xff]  }
  0x14   :  { %976 = vmatprep.subr.bf16.mxu0 %v1430_v24  ;;  %v1473_v57 = vld [vmem:[%s2090_s3 + $0x168] ss:$16 sps:$4 sm:$0xff]   ;;  %v1481_v58 = vld [vmem:[%s2090_s3 + $0x18c] ss:$16 sps:$4 sm:$0xff]   ;;  %v1476_v59 = vld [vmem:[%s2090_s3 + $0x180] ss:$16 sps:$4 sm:$0xff]  }
  0x15   :  { %1057 = vmatpush1.bf16.msra.mxu1 %v1425_v25  ;;  %v1484_v60 = vld [vmem:[%s2090_s3 + $0x1a4] ss:$16 sps:$4 sm:$0xff]   ;;  %v1479_v61 = vld [vmem:[%s2090_s3 + $0x188] ss:$16 sps:$4 sm:$0xff]   ;;  %v1487_v62 = vld [vmem:[%s2090_s3 + $0x1ac] ss:$16 sps:$4 sm:$0xff]  }
  0x16   :  { %1058 = vmatprep.subr.bf16.mxu1 %v1433_v26  ;;  %v1482_v63 = vld [vmem:[%s2090_s3 + $0x1a0] ss:$16 sps:$4 sm:$0xff]   ;;  %v1485_v0 = vld [vmem:[%s2090_s3 + $0x1a8] ss:$16 sps:$4 sm:$0xff]   ;;  %v1490_v1 = vld [vmem:[%s2090_s3 + $0x1c4] ss:$16 sps:$4 sm:$0xff]  }
  0x17   :  { %977 = vmatpush1.bf16.msra.mxu0 %v1428_v27  ;;  %v1493_v2 = vld [vmem:[%s2090_s3 + $0x1cc] ss:$16 sps:$4 sm:$0xff]   ;;  %v1488_v3 = vld [vmem:[%s2090_s3 + $0x1c0] ss:$16 sps:$4 sm:$0xff]   ;;  %v1491_v4 = vld [vmem:[%s2090_s3 + $0x1c8] ss:$16 sps:$4 sm:$0xff]  }
  0x18   :  { %978 = vmatprep.subr.bf16.mxu0 %v1436_v28  ;;  %v1496_v5 = vld [vmem:[%s2090_s3 + $0x1e4] ss:$16 sps:$4 sm:$0xff]   ;;  %v1499_v6 = vld [vmem:[%s2090_s3 + $0x1ec] ss:$16 sps:$4 sm:$0xff]   ;;  %v1494_v7 = vld [vmem:[%s2090_s3 + $0x1e0] ss:$16 sps:$4 sm:$0xff]  }
  0x19   :  { %1059 = vmatpush1.bf16.msra.mxu1 %v1431_v29  ;;  %v1497_v8 = vld [vmem:[%s2090_s3 + $0x1e8] ss:$16 sps:$4 sm:$0xff]   ;;  %v1502_v9 = vld [vmem:[%s2090_s3 + $0x204] ss:$16 sps:$4 sm:$0xff]   ;;  %v1505_v10 = vld [vmem:[%s2090_s3 + $0x20c] ss:$16 sps:$4 sm:$0xff]  }
  0x1a   :  { %1060 = vmatprep.subr.bf16.mxu1 %v1439_v30  ;;  %v1850_v12 = vshrl.u32 %v31_v11, 7  ;;  %v1856_v14 = vld [vmem:[%s2091_s2] sm:$0xf]  ;;  %v1559_v11 = vld [vmem:[%s2090_s3 + $0x32c] ss:$16 sps:$4 sm:$0xff]  }
  0x1b   :  { %979 = vmatpush1.bf16.msra.mxu0 %v1434_v31 }
  0x1c   :  { %980 = vmatprep.subr.bf16.mxu0 %v1442_v32  ;;  %v33_v13 = vsub.s32 0, %v1850_v12  ;;  %v37_v15 = vsub.s32 1, %v1850_v12  ;;  %v45_v16 = vsub.s32 3, %v1850_v12 }
  0x1d   :  { %1061 = vmatpush1.bf16.msra.mxu1 %v1437_v33 }
  0x1e   :  { %1062 = vmatprep.subr.bf16.mxu1 %v1445_v34  ;;  %v34_v17 = vrot.slane %v1856_v14, %v33_v13  ;;  %v38_v18 = vrot.slane %v1856_v14, %v37_v15  ;;  %v46_v20 = vrot.slane %v1856_v14, %v45_v16 }
  0x1f   :  { %981 = vmatpush1.bf16.msra.mxu0 %v1440_v35 }
  0x20   :  { %982 = vmatprep.subr.bf16.mxu0 %v1448_v36 }
  0x21   :  { %1063 = vmatpush1.bf16.msra.mxu1 %v1443_v37  ;;  %v1500_v37 = vld [vmem:[%s2090_s3 + $0x200] ss:$16 sps:$4 sm:$0xff]  }
  0x22   :  { %1064 = vmatprep.subr.bf16.mxu1 %v1451_v38  ;;  %v1503_v38 = vld [vmem:[%s2090_s3 + $0x208] ss:$16 sps:$4 sm:$0xff]  }
  0x23   :  { %983 = vmatpush1.bf16.msra.mxu0 %v1446_v39 }
  0x24   :  { %984 = vmatprep.subr.bf16.mxu0 %v1454_v40 }
  0x25   :  { %1065 = vmatpush1.bf16.msra.mxu1 %v1449_v41  ;;  %v1508_v41 = vld [vmem:[%s2090_s3 + $0x224] ss:$16 sps:$4 sm:$0xff]  }
  0x26   :  { %1066 = vmatprep.subr.bf16.mxu1 %v1457_v42  ;;  %v1511_v42 = vld [vmem:[%s2090_s3 + $0x22c] ss:$16 sps:$4 sm:$0xff]  }
  0x27   :  { %985 = vmatpush1.bf16.msra.mxu0 %v1452_v43 }
  0x28   :  { %986 = vmatprep.subr.bf16.mxu0 %v1460_v44  ;;  %v1506_v44 = vld [vmem:[%s2090_s3 + $0x220] ss:$16 sps:$4 sm:$0xff]  }
  0x29   :  { %1067 = vmatpush1.bf16.msra.mxu1 %v1455_v45  ;;  %v1509_v45 = vld [vmem:[%s2090_s3 + $0x228] ss:$16 sps:$4 sm:$0xff]  }
  0x2a   :  { %1068 = vmatprep.subr.bf16.mxu1 %v1463_v47  ;;  %v1517_v47 = vld [vmem:[%s2090_s3 + $0x24c] ss:$16 sps:$4 sm:$0xff]  }
  0x2b   :  { %987 = vmatpush1.bf16.msra.mxu0 %v1458_v46  ;;  %v1514_v46 = vld [vmem:[%s2090_s3 + $0x244] ss:$16 sps:$4 sm:$0xff]  }
  0x2c   :  { %988 = vmatprep.subr.bf16.mxu0 %v1466_v49  ;;  %v1515_v49 = vld [vmem:[%s2090_s3 + $0x248] ss:$16 sps:$4 sm:$0xff]  }
  0x2d   :  { %1069 = vmatpush1.bf16.msra.mxu1 %v1461_v48  ;;  %v1512_v48 = vld [vmem:[%s2090_s3 + $0x240] ss:$16 sps:$4 sm:$0xff]  }
  0x2e   :  { %1070 = vmatprep.subr.bf16.mxu1 %v1469_v50  ;;  %v1520_v50 = vld [vmem:[%s2090_s3 + $0x264] ss:$16 sps:$4 sm:$0xff]  }
  0x2f   :  { %989 = vmatpush1.bf16.msra.mxu0 %v1464_v51  ;;  %v1523_v51 = vld [vmem:[%s2090_s3 + $0x26c] ss:$16 sps:$4 sm:$0xff]  }
  0x30   :  { %990 = vmatprep.subr.bf16.mxu0 %v1472_v52  ;;  %v1518_v52 = vld [vmem:[%s2090_s3 + $0x260] ss:$16 sps:$4 sm:$0xff]  }
  0x31   :  { %1071 = vmatpush1.bf16.msra.mxu1 %v1467_v53  ;;  %v1521_v53 = vld [vmem:[%s2090_s3 + $0x268] ss:$16 sps:$4 sm:$0xff]  }
  0x32   :  { %1072 = vmatprep.subr.bf16.mxu1 %v1475_v54  ;;  %v1526_v54 = vld [vmem:[%s2090_s3 + $0x284] ss:$16 sps:$4 sm:$0xff]  }
  0x33   :  { %991 = vmatpush1.bf16.msra.mxu0 %v1470_v55  ;;  %v1529_v55 = vld [vmem:[%s2090_s3 + $0x28c] ss:$16 sps:$4 sm:$0xff]  }
  0x34   :  { %992 = vmatprep.subr.bf16.mxu0 %v1478_v56  ;;  %v1524_v56 = vld [vmem:[%s2090_s3 + $0x280] ss:$16 sps:$4 sm:$0xff]  }
  0x35   :  { %1073 = vmatpush1.bf16.msra.mxu1 %v1473_v57  ;;  %v1527_v57 = vld [vmem:[%s2090_s3 + $0x288] ss:$16 sps:$4 sm:$0xff]  }
  0x36   :  { %1074 = vmatprep.subr.bf16.mxu1 %v1481_v58  ;;  %v1532_v58 = vld [vmem:[%s2090_s3 + $0x2a4] ss:$16 sps:$4 sm:$0xff]  }
  0x37   :  { %993 = vmatpush1.bf16.msra.mxu0 %v1476_v59  ;;  %v1535_v59 = vld [vmem:[%s2090_s3 + $0x2ac] ss:$16 sps:$4 sm:$0xff]  }
  0x38   :  { %994 = vmatprep.subr.bf16.mxu0 %v1484_v60  ;;  %v1530_v60 = vld [vmem:[%s2090_s3 + $0x2a0] ss:$16 sps:$4 sm:$0xff]  }
  0x39   :  { %1075 = vmatpush1.bf16.msra.mxu1 %v1479_v61  ;;  %v1533_v61 = vld [vmem:[%s2090_s3 + $0x2a8] ss:$16 sps:$4 sm:$0xff]  }
  0x3a   :  { %1076 = vmatprep.subr.bf16.mxu1 %v1487_v62  ;;  %v1538_v62 = vld [vmem:[%s2090_s3 + $0x2c4] ss:$16 sps:$4 sm:$0xff]  }
  0x3b   :  { %995 = vmatpush1.bf16.msra.mxu0 %v1482_v63  ;;  %v1541_v63 = vld [vmem:[%s2090_s3 + $0x2cc] ss:$16 sps:$4 sm:$0xff]  }
  0x3c   :  { %996 = vmatprep.subr.bf16.mxu0 %v1490_v1  ;;  %v1539_v1 = vld [vmem:[%s2090_s3 + $0x2c8] ss:$16 sps:$4 sm:$0xff]  }
  0x3d   :  { %1077 = vmatpush1.bf16.msra.mxu1 %v1485_v0  ;;  %v1536_v0 = vld [vmem:[%s2090_s3 + $0x2c0] ss:$16 sps:$4 sm:$0xff]  }
  0x3e   :  { %1078 = vmatprep.subr.bf16.mxu1 %v1493_v2  ;;  %v1544_v2 = vld [vmem:[%s2090_s3 + $0x2e4] ss:$16 sps:$4 sm:$0xff]  }
  0x3f   :  { %997 = vmatpush1.bf16.msra.mxu0 %v1488_v3  ;;  %v1547_v3 = vld [vmem:[%s2090_s3 + $0x2ec] ss:$16 sps:$4 sm:$0xff]  }
  0x40   :  { %998 = vmatprep.subr.bf16.mxu0 %v1496_v5  ;;  %v1545_v5 = vld [vmem:[%s2090_s3 + $0x2e8] ss:$16 sps:$4 sm:$0xff]  }
  0x41   :  { %1079 = vmatpush1.bf16.msra.mxu1 %v1491_v4  ;;  %v1542_v4 = vld [vmem:[%s2090_s3 + $0x2e0] ss:$16 sps:$4 sm:$0xff]  }
  0x42   :  { %1080 = vmatprep.subr.bf16.mxu1 %v1499_v6  ;;  %v1550_v6 = vld [vmem:[%s2090_s3 + $0x304] ss:$16 sps:$4 sm:$0xff]  }
  0x43   :  { %999 = vmatpush1.bf16.msra.mxu0 %v1494_v7  ;;  %v1553_v7 = vld [vmem:[%s2090_s3 + $0x30c] ss:$16 sps:$4 sm:$0xff]  }
  0x44   :  { %1009 = vmatprep.subr.bf16.mxu0 %v1502_v9  ;;  %v1551_v9 = vld [vmem:[%s2090_s3 + $0x308] ss:$16 sps:$4 sm:$0xff]  }
  0x45   :  { %1081 = vmatpush1.bf16.msra.mxu1 %v1497_v8  ;;  %v1548_v8 = vld [vmem:[%s2090_s3 + $0x300] ss:$16 sps:$4 sm:$0xff]  }
  0x46   :  { %1091 = vmatprep.subr.bf16.mxu1 %v1505_v10  ;;  %v1556_v10 = vld [vmem:[%s2090_s3 + $0x324] ss:$16 sps:$4 sm:$0xff]  }
  0xd9   :  { %v118_v19 = vpop.f32.mrb[0].mxu0 }
  0xda   :  { %v119_v21 = vadd.f32 %v118_v19, %v34_v17  ;;  %v120_v22 = vpop.f32.mrb[1].mxu0  ;;  %v1554_v17 = vld [vmem:[%s2090_s3 + $0x320] ss:$16 sps:$4 sm:$0xff]   ;;  %v1562_v19 = vld [vmem:[%s2090_s3 + $0x344] ss:$16 sps:$4 sm:$0xff]  }
  0xdb   :  { %v121_v23 = vadd.f32 %v120_v22, %v38_v18  ;;  %v122_v24 = vpop.f32.mrb[2].mxu0  ;;  %v1869_v25 = vpop.f32.mrb[0].mxu1  ;;  %v1557_v18 = vld [vmem:[%s2090_s3 + $0x328] ss:$16 sps:$4 sm:$0xff]  }
  0xdc   :  { %v166_v26 = vmul.f32 0.2, %v119_v21  ;;  %v123_v27 = vpop.f32.mrb[3].mxu0  ;;  %v161_v28 = vpop.f32.mrb[1].mxu1  ;;  %v1563_v22 = vld [vmem:[%s2090_s3 + $0x348] ss:$16 sps:$4 sm:$0xff]  }
  0xdd   :  { %v167_v29 = vmul.f32 0.2, %v121_v23  ;;  %v162_v30 = vadd.f32 %v161_v28, %v46_v20  ;;  %v163_v31 = vpop.f32.mrb[2].mxu1  ;;  %v1565_v20 = vld [vmem:[%s2090_s3 + $0x34c] ss:$16 sps:$4 sm:$0xff]  }
  0xde   :  { %v170_v32 = vmax.f32 %v119_v21, %v166_v26  ;;  %v164_v33 = vpop.f32.mrb[3].mxu1  ;;  %v1560_v21 = vld [vmem:[%s2090_s3 + $0x340] ss:$16 sps:$4 sm:$0xff]   ;;  %v1571_v24 = vld [vmem:[%s2090_s3 + $0x36c] ss:$16 sps:$4 sm:$0xff]  }
  0xdf   :  { %v171_v34 = vmax.f32 %v121_v23, %v167_v29  ;;  %v169_v35 = vmul.f32 0.2, %v162_v30  ;;  %v1568_v23 = vld [vmem:[%s2090_s3 + $0x364] ss:$16 sps:$4 sm:$0xff]   ;;  %v1566_v26 = vld [vmem:[%s2090_s3 + $0x360] ss:$16 sps:$4 sm:$0xff]  }
  0xe0   :  { %v174_v40 = vpack.c.bf16 %v170_v32, %v170_v32  ;;  %v1569_v27 = vld [vmem:[%s2090_s3 + $0x368] ss:$16 sps:$4 sm:$0xff]   ;;  %v1574_v28 = vld [vmem:[%s2090_s3 + $0x384] ss:$16 sps:$4 sm:$0xff]   ;;  %v1577_v29 = vld [vmem:[%s2090_s3 + $0x38c] ss:$16 sps:$4 sm:$0xff]  }
  0xe1   :  { %v175_v36 = vpack.c.bf16 %v171_v34, %v171_v34  ;;  %v173_v39 = vmax.f32 %v162_v30, %v169_v35  ;;  %v41_v30 = vsub.s32 2, %v1850_v12  ;;  %v1572_v31 = vld [vmem:[%s2090_s3 + $0x380] ss:$16 sps:$4 sm:$0xff]   ;;  %v1575_v32 = vld [vmem:[%s2090_s3 + $0x388] ss:$16 sps:$4 sm:$0xff]  }
  0xe2   :  { %v1580_v34 = vld [vmem:[%s2090_s3 + $0x3a4] ss:$16 sps:$4 sm:$0xff]   ;;  %v1583_v35 = vld [vmem:[%s2090_s3 + $0x3ac] ss:$16 sps:$4 sm:$0xff]  }
  0xe3   :  { %1000 = vmatprep.mubr.bf16.mxu0 %v175_v36  ;;  %1082 = vmatprep.mubr.bf16.mxu1 %v175_v36  ;;  %v177_v43 = vpack.c.bf16 %v173_v39, %v173_v39  ;;  %v42_v33 = vrot.slane %v1856_v14, %v41_v30  ;;  %v1578_v36 = vld [vmem:[%s2090_s3 + $0x3a0] ss:$16 sps:$4 sm:$0xff]   ;;  %v1589_v39 = vld [vmem:[%s2090_s3 + $0x3cc] ss:$16 sps:$4 sm:$0xff]  }
  0xe4   :  { %1001 = vmatmul.mubr.bf16.vlgmr.msra.gmra.mrb[4].mxu0 %v174_v40  ;;  %1083 = vmatmul.mubr.bf16.vlgmr.msra.gmra.mrb[4].mxu1 %v174_v40  ;;  %v1584_v40 = vld [vmem:[%s2090_s3 + $0x3c0] ss:$16 sps:$4 sm:$0xff]  }
  0xe5   :  { %1010 = vmatpush1.bf16.msra.mxu0 %v1500_v37  ;;  %1092 = vmatpush1.bf16.msra.mxu1 %v1503_v38  ;;  %v1581_v37 = vld [vmem:[%s2090_s3 + $0x3a8] ss:$16 sps:$4 sm:$0xff]   ;;  %v160_v14 = vadd.f32 %v1869_v25, %v42_v33  ;;  %v1586_v38 = vld [vmem:[%s2090_s3 + $0x3c4] ss:$16 sps:$4 sm:$0xff]  }
  0xe6   :  { %1011 = vmatprep.subr.bf16.mxu0 %v1508_v41  ;;  %1093 = vmatprep.subr.bf16.mxu1 %v1511_v42  ;;  %v1587_v25 = vld [vmem:[%s2090_s3 + $0x3c8] ss:$16 sps:$4 sm:$0xff]   ;;  %v1592_v42 = vld [vmem:[%s2090_s3 + $0x3e4] ss:$16 sps:$4 sm:$0xff]  }
  0xe7   :  { %1041 = vmatprep.mubr.bf16.mxu0 %v177_v43  ;;  %1123 = vmatprep.mubr.bf16.mxu1 %v177_v43  ;;  %v168_v41 = vmul.f32 0.2, %v160_v14  ;;  %v1595_v43 = vld [vmem:[%s2090_s3 + $0x3ec] ss:$16 sps:$4 sm:$0xff]  }
  0xe9   :  { %1012 = vmatpush1.bf16.msra.mxu0 %v1506_v44  ;;  %1094 = vmatpush1.bf16.msra.mxu1 %v1509_v45  ;;  %v1590_v44 = vld [vmem:[%s2090_s3 + $0x3e0] ss:$16 sps:$4 sm:$0xff]   ;;  %v1593_v45 = vld [vmem:[%s2090_s3 + $0x3e8] ss:$16 sps:$4 sm:$0xff]  }
  0xea   :  { %1013 = vmatprep.subr.bf16.mxu0 %v1514_v46  ;;  %1095 = vmatprep.subr.bf16.mxu1 %v1517_v47  ;;  %v172_v46 = vmax.f32 %v160_v14, %v168_v41 }
  0xec   :  { %v176_v47 = vpack.c.bf16 %v172_v46, %v172_v46 }
  0xed   :  { %1014 = vmatpush1.bf16.msra.mxu0 %v1512_v48  ;;  %1096 = vmatpush1.bf16.msra.mxu1 %v1515_v49  ;;  %v306_v48 = vld [vmem:[%s2092_s4] sm:$0xf] }
  0xee   :  { %1015 = vmatprep.subr.bf16.mxu0 %v1520_v50  ;;  %1097 = vmatprep.subr.bf16.mxu1 %v1523_v51  ;;  %v311_v49 = vrot.slane %v306_v48, %v33_v13  ;;  %v319_v50 = vrot.slane %v306_v48, %v41_v30  ;;  %v315_v51 = vrot.slane %v306_v48, %v37_v15 }
  0xf1   :  { %1016 = vmatpush1.bf16.msra.mxu0 %v1518_v52  ;;  %1098 = vmatpush1.bf16.msra.mxu1 %v1521_v53  ;;  %v323_v52 = vrot.slane %v306_v48, %v45_v16 }
  0xf2   :  { %1017 = vmatprep.subr.bf16.mxu0 %v1526_v54  ;;  %1099 = vmatprep.subr.bf16.mxu1 %v1529_v55 }
  0xf5   :  { %1018 = vmatpush1.bf16.msra.mxu0 %v1524_v56  ;;  %1100 = vmatpush1.bf16.msra.mxu1 %v1527_v57 }
  0xf6   :  { %1019 = vmatprep.subr.bf16.mxu0 %v1532_v58  ;;  %1101 = vmatprep.subr.bf16.mxu1 %v1535_v59 }
  0xf9   :  { %1020 = vmatpush1.bf16.msra.mxu0 %v1530_v60  ;;  %1102 = vmatpush1.bf16.msra.mxu1 %v1533_v61  ;;  %v1597_v60 = vmov 1983009808  }
  0xfa   :  { %1021 = vmatprep.subr.bf16.mxu0 %v1538_v62  ;;  %1103 = vmatprep.subr.bf16.mxu1 %v1541_v63  ;;  %v2069_v61 = vunpack.c.l.s4 %v1597_v60 }
  0xfc   :  { %v1219_v46 = vunpack.c.0.s8 %v2069_v61 }
  0xfd   :  { %1022 = vmatpush1.bf16.msra.mxu0 %v1536_v0  ;;  %1104 = vmatpush1.bf16.msra.mxu1 %v1539_v1 }
  0xfe   :  { %1023 = vmatprep.subr.bf16.mxu0 %v1544_v2  ;;  %1105 = vmatprep.subr.bf16.mxu1 %v1547_v3 }
 0x101   :  { %1024 = vmatpush1.bf16.msra.mxu0 %v1542_v4  ;;  %1106 = vmatpush1.bf16.msra.mxu1 %v1545_v5 }
 0x102   :  { %1025 = vmatprep.subr.bf16.mxu0 %v1550_v6  ;;  %1107 = vmatprep.subr.bf16.mxu1 %v1553_v7 }
 0x105   :  { %1026 = vmatpush1.bf16.msra.mxu0 %v1548_v8  ;;  %1108 = vmatpush1.bf16.msra.mxu1 %v1551_v9 }
 0x106   :  { %1027 = vmatprep.subr.bf16.mxu0 %v1556_v10  ;;  %1109 = vmatprep.subr.bf16.mxu1 %v1559_v11 }
 0x109   :  { %1028 = vmatpush1.bf16.msra.mxu0 %v1554_v17  ;;  %1110 = vmatpush1.bf16.msra.mxu1 %v1557_v18 }
 0x10a   :  { %1029 = vmatprep.subr.bf16.mxu0 %v1562_v19  ;;  %1111 = vmatprep.subr.bf16.mxu1 %v1565_v20 }
 0x10d   :  { %1030 = vmatpush1.bf16.msra.mxu0 %v1560_v21  ;;  %1112 = vmatpush1.bf16.msra.mxu1 %v1563_v22 }
 0x10e   :  { %1031 = vmatprep.subr.bf16.mxu0 %v1568_v23  ;;  %1113 = vmatprep.subr.bf16.mxu1 %v1571_v24 }
 0x111   :  { %1032 = vmatpush1.bf16.msra.mxu0 %v1566_v26  ;;  %1114 = vmatpush1.bf16.msra.mxu1 %v1569_v27 }
 0x112   :  { %1033 = vmatprep.subr.bf16.mxu0 %v1574_v28  ;;  %1115 = vmatprep.subr.bf16.mxu1 %v1577_v29 }
 0x115   :  { %1034 = vmatpush1.bf16.msra.mxu0 %v1572_v31  ;;  %1116 = vmatpush1.bf16.msra.mxu1 %v1575_v32 }
 0x116   :  { %1035 = vmatprep.subr.bf16.mxu0 %v1580_v34  ;;  %1117 = vmatprep.subr.bf16.mxu1 %v1583_v35 }
 0x119   :  { %1036 = vmatpush1.bf16.msra.mxu0 %v1578_v36  ;;  %1118 = vmatpush1.bf16.msra.mxu1 %v1581_v37 }
 0x11a   :  { %1037 = vmatprep.subr.bf16.mxu0 %v1586_v38  ;;  %1119 = vmatprep.subr.bf16.mxu1 %v1589_v39 }
 0x11d   :  { %1038 = vmatpush1.bf16.msra.mxu0 %v1584_v40  ;;  %1120 = vmatpush1.bf16.msra.mxu1 %v1587_v25 }
 0x11e   :  { %1039 = vmatprep.subr.bf16.mxu0 %v1592_v42  ;;  %1121 = vmatprep.subr.bf16.mxu1 %v1595_v43 }
 0x121   :  { %1040 = vmatpush1.bf16.msra.mxu0 %v1590_v44  ;;  %1122 = vmatpush1.bf16.msra.mxu1 %v1593_v45 }
 0x124   :  { %1042 = vmatmul.mubr.bf16.vlgmr.msra.gmra.mrb[4].mxu0 %v176_v47  ;;  %1124 = vmatmul.mubr.bf16.vlgmr.msra.gmra.mrb[4].mxu1 %v176_v47 }
 0x1f7   :  { %v1043_v53 = vpop.f32.mrb[4].mxu0  ;;  %v1125_v54 = vpop.f32.mrb[4].mxu1 }
 0x1f8   :  { %v1384_v55 = vadd.f32 %v1043_v53, %v311_v49  ;;  %v1386_v56 = vadd.f32 %v1125_v54, %v319_v50  ;;  %v1045_v57 = vpop.f32.mrb[5].mxu0  ;;  %v1127_v58 = vpop.f32.mrb[5].mxu1 }
 0x1f9   :  { %v1385_v59 = vadd.f32 %v1045_v57, %v315_v51  ;;  %v1387_v62 = vadd.f32 %v1127_v58, %v323_v52  ;;  %v1047_v63 = vpop.f32.mrb[6].mxu0  ;;  %v1129_v13 = vpop.f32.mrb[6].mxu1 }
 0x1fa   :  { %1132 = vst [vmem:[%s2093_s5] sm:$0xff] %v1384_v55  ;;  %v1148_v15 = vrot.slane %v1384_v55, 4  ;;  %v1172_v0 = vmul.f32 %v1384_v55, %v1384_v55  ;;  %1134 = vst [vmem:[%s2093_s5 + $0x10] sm:$0xff] %v1386_v56  ;;  %v1160_v16 = vrot.slane %v1386_v56, 4  ;;  %v1174_v1 = vmul.f32 %v1386_v56, %v1386_v56  ;;  %v1048_v2 = vpop.f32.mrb[7].mxu0  ;;  %v1130_v3 = vpop.f32.mrb[7].mxu1 }
 0x1fb   :  { %1133 = vst [vmem:[%s2093_s5 + $0x8] sm:$0xff] %v1385_v59  ;;  %v1154_v4 = vrot.slane %v1385_v59, 4  ;;  %v1173_v5 = vmul.f32 %v1385_v59, %v1385_v59  ;;  %1135 = vst [vmem:[%s2093_s5 + $0x18] sm:$0xff] %v1387_v62  ;;  %v1166_v6 = vrot.slane %v1387_v62, 4  ;;  %v1175_v7 = vmul.f32 %v1387_v62, %v1387_v62 }
 0x1fc   :  { %v1149_v8 = vadd.f32 %v1384_v55, %v1148_v15  ;;  %v1176_v9 = vrot.slane %v1172_v0, 4  ;;  %v1161_v10 = vadd.f32 %v1386_v56, %v1160_v16  ;;  %v1188_v11 = vrot.slane %v1174_v1, 4 }
 0x1fd   :  { %v1155_v17 = vadd.f32 %v1385_v59, %v1154_v4  ;;  %v1182_v18 = vrot.slane %v1173_v5, 4  ;;  %v1167_v19 = vadd.f32 %v1387_v62, %v1166_v6  ;;  %v1194_v20 = vrot.slane %v1175_v7, 4 }
 0x1fe   :  { %v1150_v21 = vrot.slane %v1149_v8, 2  ;;  %v1177_v22 = vadd.f32 %v1176_v9, %v1172_v0  ;;  %v1162_v23 = vrot.slane %v1161_v10, 2  ;;  %v1189_v24 = vadd.f32 %v1188_v11, %v1174_v1 }
 0x1ff   :  { %v1156_v26 = vrot.slane %v1155_v17, 2  ;;  %v1183_v27 = vadd.f32 %v1182_v18, %v1173_v5  ;;  %v1168_v28 = vrot.slane %v1167_v19, 2  ;;  %v1195_v29 = vadd.f32 %v1194_v20, %v1175_v7 }
 0x200   :  { %v1151_v30 = vadd.f32 %v1150_v21, %v1149_v8  ;;  %v1178_v31 = vrot.slane %v1177_v22, 2  ;;  %v1163_v32 = vadd.f32 %v1162_v23, %v1161_v10  ;;  %v1190_v33 = vrot.slane %v1189_v24, 2 }
 0x201   :  { %v1157_v34 = vadd.f32 %v1156_v26, %v1155_v17  ;;  %v1184_v35 = vrot.slane %v1183_v27, 2  ;;  %v1169_v36 = vadd.f32 %v1168_v28, %v1167_v19  ;;  %v1196_v37 = vrot.slane %v1195_v29, 2 }
 0x202   :  { %v1152_v14 = vrot.slane %v1151_v30, 1  ;;  %v1179_v38 = vadd.f32 %v1178_v31, %v1177_v22  ;;  %v1164_v39 = vrot.slane %v1163_v32, 1  ;;  %v1191_v40 = vadd.f32 %v1190_v33, %v1189_v24 }
 0x203   :  { %v1158_v25 = vrot.slane %v1157_v34, 1  ;;  %v1185_v41 = vadd.f32 %v1184_v35, %v1183_v27  ;;  %v1170_v42 = vrot.slane %v1169_v36, 1  ;;  %v1197_v43 = vadd.f32 %v1196_v37, %v1195_v29 }
 0x204   :  { %v1180_v44 = vrot.slane %v1179_v38, 1  ;;  %v1192_v45 = vrot.slane %v1191_v40, 1  ;;  %v1153_v49 = vadd.f32 %v1152_v14, %v1151_v30  ;;  %v1165_v51 = vadd.f32 %v1164_v39, %v1163_v32 }
 0x205   :  { %v1186_v47 = vrot.slane %v1185_v41, 1  ;;  %v1198_v48 = vrot.slane %v1197_v43, 1  ;;  %v1159_v53 = vadd.f32 %v1158_v25, %v1157_v34  ;;  %v1171_v55 = vadd.f32 %v1170_v42, %v1169_v36 }
 0x206   :  { %v1181_v50 = vadd.f32 %v1180_v44, %v1179_v38  ;;  %v1193_v52 = vadd.f32 %v1192_v45, %v1191_v40  ;;  %v1222_v59 = vsub.s32 %v1219_v46, %v1850_v12 }
 0x207   :  { %v1187_v54 = vadd.f32 %v1186_v47, %v1185_v41  ;;  %v1199_v56 = vadd.f32 %v1198_v48, %v1197_v43 }
 0x208   :  { %v1201_v57 = vsel %vm1200_vm2, %v1153_v49, %v1181_v50  ;;  %v1203_v58 = vsel %vm1200_vm2, %v1165_v51, %v1193_v52 }
 0x209   :  { %v1202_v60 = vsel %vm1200_vm2, %v1159_v53, %v1187_v54  ;;  %v1204_v62 = vsel %vm1200_vm2, %v1171_v55, %v1199_v56 }
 0x20a   :  { %v1215_v63 = vcombine.low %v1201_v57, %v1202_v60  ;;  %v1216_v13 = vcombine.low %v1203_v58, %v1204_v62 }
 0x20c   :  { %v1223_v61 = vrot.slane %v1215_v63, %v1222_v59  ;;  %v1230_v15 = vrot.slane %v1216_v13, %v1222_v59 }
 0x20e   :  { %v1231_v0 = vcombine.low %v1223_v61, %v1230_v15 }
 0x210   :  { %1239 = vst [vmem:[%s2094_s6] sm:$0xff] %v1231_v0 }

</bundles_post_ra>
